<compile_context>
chip_gen: v5e
topology: v5e:2x2
jax: 0.10.0
libtpu: 0.0.40
codegen_flags: <defaults>
</compile_context>

<pallas_src>
import functools

import jax
import jax.numpy as jnp
from jax.experimental import pallas as pl
from jax.experimental.pallas import tpu as pltpu


def _round_up(x, m):
    return ((x + m - 1) // m) * m


def _largest_divisor_tile(total, candidates):
    for c in candidates:
        if total % c == 0:
            return c
    return total


# ----------------------------------------------------------------------------
# Pallas kernel: tiled (patches @ W) with f32 accumulator, fused bias + act
# ----------------------------------------------------------------------------
def _matmul_bias_act_kernel(x_ref, w_ref, b_ref, o_ref, acc_ref, *, alpha):
    @pl.when(pl.program_id(2) == 0)
    def _():
        acc_ref[...] = jnp.zeros_like(acc_ref)

    acc_ref[...] += jnp.dot(x_ref[...], w_ref[...],
                            preferred_element_type=jnp.float32)

    @pl.when(pl.program_id(2) == pl.num_programs(2) - 1)
    def _():
        acc = acc_ref[...] + b_ref[...]          # (1, tn) broadcasts over rows
        if alpha is not None:                    # LeakyReLU in f32, once
            acc = jnp.where(acc >= 0.0, acc, alpha * acc)
        o_ref[...] = acc.astype(o_ref.dtype)


# ----------------------------------------------------------------------------
# im2col (plain JAX glue: pad / strided slices / concat only)
# ----------------------------------------------------------------------------
def _im2col(x_nhwc, kh, kw, stride, pad):
    """Extract conv patches. Returns (M, K) with K ordered (kh, kw, Cin)."""
    n, h, w, c = x_nhwc.shape
    if pad > 0:
        x_nhwc = jnp.pad(x_nhwc, ((0, 0), (pad, pad), (pad, pad), (0, 0)))
    ho = (h + 2 * pad - kh) // stride + 1
    wo = (w + 2 * pad - kw) // stride + 1
    cols = []
    for i in range(kh):
        for j in range(kw):
            cols.append(
                x_nhwc[:, i:i + stride * ho:stride, j:j + stride * wo:stride, :])
    patches = jnp.concatenate(cols, axis=-1)             # (N, Ho, Wo, kh*kw*C)
    return patches.reshape(n * ho * wo, kh * kw * c), ho, wo


# ----------------------------------------------------------------------------
# Weight preparation (done once, not per forward)
# ----------------------------------------------------------------------------
def _prepare_conv(w_oihw, bias, *, stride, pad, alpha, out_dtype):
    """Pre-transpose to (kh,kw,Cin)->Cout order, pad to x128 tiles, cast bf16."""
    cout, cin, kh, kw = w_oihw.shape
    k = kh * kw * cin
    kp = _round_up(k, 128)
    np_ = _round_up(cout, 128)
    w_mat = jnp.transpose(w_oihw, (2, 3, 1, 0)).reshape(k, cout)
    w_pad = jnp.pad(w_mat, ((0, kp - k), (0, np_ - cout))).astype(jnp.bfloat16)
    b_vec = bias if bias is not None else jnp.zeros((cout,), jnp.float32)
    b_pad = jnp.pad(b_vec.astype(jnp.float32), (0, np_ - cout)).reshape(1, np_)
    return dict(w=w_pad, b=b_pad, kh=kh, kw=kw, cin=cin, cout=cout, k=k,
                stride=stride, pad=pad, alpha=alpha, out_dtype=out_dtype)


# ----------------------------------------------------------------------------
# Conv2d = im2col + tiled fused Pallas matmul
# ----------------------------------------------------------------------------
def conv2d_pallas(x_nhwc, conv):
    kh, kw, cout, k = conv["kh"], conv["kw"], conv["cout"], conv["k"]
    stride, pad, alpha = conv["stride"], conv["pad"], conv["alpha"]
    out_dtype = conv["out_dtype"]
    n = x_nhwc.shape[0]

    # bf16 activations halve im2col + matmul-input HBM traffic.
    patches, ho, wo = _im2col(x_nhwc.astype(jnp.bfloat16), kh, kw, stride, pad)
    m = patches.shape[0]
    kp, np_ = conv["w"].shape

    # Tile sizes: lane dims are multiples of 128 (pre-padded), rows mult. of 8.
    if m <= 512:
        tm = _round_up(m, 8)
    else:
        tm = 512
    mp = _round_up(m, tm)
    tn = _largest_divisor_tile(np_, (256, 128))
    tk = _largest_divisor_tile(kp, (512, 256, 128))

    # Single pad of the (already bf16) patches.
    xp = patches
    if mp != m or kp != k:
        xp = jnp.pad(xp, ((0, mp - m), (0, kp - k)))

    grid = (mp // tm, np_ // tn, kp // tk)
    out_bytes = jnp.dtype(out_dtype).itemsize
    cost = pl.CostEstimate(
        flops=2 * mp * kp * np_,
        transcendentals=0,
        bytes_accessed=xp.size * 2 + conv["w"].size * 2
        + conv["b"].size * 4 + mp * np_ * out_bytes)

    out = pl.pallas_call(
        functools.partial(_matmul_bias_act_kernel, alpha=alpha),
        out_shape=jax.ShapeDtypeStruct((mp, np_), out_dtype),
        grid=grid,
        in_specs=[
            pl.BlockSpec((tm, tk), lambda i, j, kk: (i, kk)),
            pl.BlockSpec((tk, tn), lambda i, j, kk: (kk, j)),
            pl.BlockSpec((1, tn), lambda i, j, kk: (0, j)),
        ],
        out_specs=pl.BlockSpec((tm, tn), lambda i, j, kk: (i, j)),
        scratch_shapes=[pltpu.VMEM((tm, tn), jnp.float32)],
        compiler_params=pltpu.CompilerParams(
            dimension_semantics=("parallel", "parallel", "arbitrary"),
            vmem_limit_bytes=64 * 1024 * 1024),
        cost_estimate=cost,
    )(xp, conv["w"], conv["b"])

    return out[:m, :cout].reshape(n, ho, wo, cout)


# ----------------------------------------------------------------------------
# Discriminator: parameter construction + forward
# ----------------------------------------------------------------------------
def init_discriminator_params(key, img_shape=(3, 128, 128), c_dim=5, n_strided=6):
    channels, img_size, _ = img_shape
    raw = {"blocks": []}
    in_f, out_f = channels, 64
    for _ in range(n_strided):
        key, kw_, kb_ = jax.random.split(key, 3)
        w = jax.random.normal(kw_, (out_f, in_f, 4, 4), jnp.float32) * 0.05
        b = jax.random.normal(kb_, (out_f,), jnp.float32) * 0.05
        raw["blocks"].append((w, b))
        in_f, out_f = out_f, out_f * 2
    curr_dim = in_f
    ksize = img_size // (2 ** n_strided)
    key, k1, k2 = jax.random.split(key, 3)
    raw["out1_w"] = jax.random.normal(k1, (1, curr_dim, 3, 3), jnp.float32) * 0.05
    raw["out2_w"] = jax.random.normal(k2, (c_dim, curr_dim, ksize, ksize),
                                      jnp.float32) * 0.05
    return raw


def prepare_discriminator_params(raw):
    # Intermediate blocks store bf16 activations (halves inter-layer HBM
    # traffic; identical rounding to casting at the next matmul input).
    prepared = {
        "blocks": [_prepare_conv(w, b, stride=2, pad=1, alpha=0.01,
                                 out_dtype=jnp.bfloat16)
                   for (w, b) in raw["blocks"]],
        "out1": _prepare_conv(raw["out1_w"], None, stride=1, pad=1, alpha=None,
                              out_dtype=jnp.float32),
        "out2": _prepare_conv(raw["out2_w"], None, stride=1, pad=0, alpha=None,
                              out_dtype=jnp.float32),
    }
    return prepared


def discriminator_forward(img_nchw, prepared):
    # NCHW (PyTorch) -> NHWC (kernel layout)
    x = jnp.transpose(img_nchw, (0, 2, 3, 1)).astype(jnp.float32)

    # Strided downsampling blocks: Conv(4, s=2, p=1) + LeakyReLU(0.01)
    for conv in prepared["blocks"]:
        x = conv2d_pallas(x, conv)

    feat = x                                                # (N, h, w, curr_dim)

    # out1: Conv(3x3, p=1, no bias), no activation
    out_adv = conv2d_pallas(feat, prepared["out1"])
    out_adv = jnp.transpose(out_adv, (0, 3, 1, 2))          # back to NCHW

    # out2: Conv(kxk, no pad, no bias) -> (N, c_dim, 1, 1) -> flatten
    out_cls = conv2d_pallas(feat, prepared["out2"])
    out_cls = out_cls.reshape(out_cls.shape[0], -1)         # (N, c_dim)

    return out_adv, out_cls


# ----------------------------------------------------------------------------
# Pure-JAX reference (for correctness check only)
# ----------------------------------------------------------------------------
def _ref_conv(x_nhwc, w_oihw, bias, stride, pad, alpha):
    w_hwio = jnp.transpose(w_oihw, (2, 3, 1, 0))
    y = jax.lax.conv_general_dilated(
        x_nhwc, w_hwio, (stride, stride), [(pad, pad), (pad, pad)],
        dimension_numbers=("NHWC", "HWIO", "NHWC"))
    if bias is not None:
        y = y + bias
    if alpha is not None:
        y = jnp.where(y >= 0.0, y, alpha * y)
    return y


def _ref_forward(img_nchw, raw):
    x = jnp.transpose(img_nchw, (0, 2, 3, 1)).astype(jnp.float32)
    for w, b in raw["blocks"]:
        x = _ref_conv(x, w, b, 2, 1, 0.01)
    out_adv = _ref_conv(x, raw["out1_w"], None, 1, 1, None)
    out_adv = jnp.transpose(out_adv, (0, 3, 1, 2))
    out_cls = _ref_conv(x, raw["out2_w"], None, 1, 0, None)
    out_cls = out_cls.reshape(out_cls.shape[0], -1)
    return out_adv, out_cls


if __name__ == "__main__":
    # Small, module-consistent configuration:
    #   img_shape=(4, 16, 16), n_strided=2 -> feature map 4x4 with 128 channels,
    #   out2 kernel_size = 16 // 2**2 = 4, c_dim = 5.
    IMG_SHAPE = (4, 16, 16)
    C_DIM = 5
    N_STRIDED = 2
    BATCH = 2

    key = jax.random.PRNGKey(0)
    key, pkey, xkey = jax.random.split(key, 3)

    raw_params = init_discriminator_params(pkey, IMG_SHAPE, C_DIM, N_STRIDED)
    prepared = prepare_discriminator_params(raw_params)
    x = jax.random.normal(xkey, (BATCH,) + IMG_SHAPE, jnp.float32)

    fwd = jax.jit(lambda img: discriminator_forward(img, prepared))
    out_adv, out_cls = fwd(x)
    jax.block_until_ready((out_adv, out_cls))

    assert out_adv.shape == (BATCH, 1, IMG_SHAPE[1] // 2 ** N_STRIDED,
                             IMG_SHAPE[2] // 2 ** N_STRIDED), out_adv.shape
    assert out_cls.shape == (BATCH, C_DIM), out_cls.shape

    # Correctness check against the pure-JAX (f32) reference; bf16 MXU operands
    # and bf16 intermediate activations with f32 accumulation stay well within
    # this tolerance.
    ref_adv, ref_cls = _ref_forward(x, raw_params)
    err_adv = float(jnp.max(jnp.abs(out_adv - ref_adv))
                    / (jnp.max(jnp.abs(ref_adv)) + 1e-6))
    err_cls = float(jnp.max(jnp.abs(out_cls - ref_cls))
                    / (jnp.max(jnp.abs(ref_cls)) + 1e-6))
    assert err_adv < 5e-2, f"out_adv mismatch: rel err {err_adv}"
    assert err_cls < 5e-2, f"out_cls mismatch: rel err {err_cls}"

    print("KERNEL_OK")
</pallas_src>

<mosaic_0001>
module attributes {stable_mosaic.version = 11 : i64} {
  func.func @_matmul_bias_act_kernel(%arg0: i32, %arg1: i32, %arg2: i32, %arg3: memref<128x128xbf16, #tpu.memory_space<vmem>>, %arg4: memref<128x128xbf16, #tpu.memory_space<vmem>>, %arg5: memref<1x128xf32, #tpu.memory_space<vmem>>, %arg6: memref<128x128xbf16, #tpu.memory_space<vmem>>, %arg7: memref<128x128xf32, #tpu.memory_space<vmem>>) attributes {dimension_semantics = [#tpu.dimension_semantics<parallel>, #tpu.dimension_semantics<parallel>, #tpu.dimension_semantics<arbitrary>], iteration_bounds = array<i64: 1, 1, 1>, scalar_prefetch = 0 : i64, scratch_operands = 1 : i64, tpu.core_type = #tpu.core_type<tc>, window_params = [{transform_indices = @transform_0, window_bounds = array<i64: 128, 128>}, {transform_indices = @transform_1, window_bounds = array<i64: 128, 128>}, {transform_indices = @transform_2, window_bounds = array<i64: 1, 128>}, {transform_indices = @transform_3, window_bounds = array<i64: 128, 128>}]} {
    %c0_i32 = arith.constant 0 : i32
    %0 = arith.cmpi eq, %arg2, %c0_i32 : i32
    %1 = arith.extui %0 : i1 to i32
    %c0_i32_0 = arith.constant 0 : i32
    %2 = arith.cmpi ne, %1, %c0_i32_0 : i32
    scf.if %2 {
      %cst_10 = arith.constant 0.000000e+00 : f32
      %12 = vector.broadcast %cst_10 : f32 to vector<128x128xf32>
      %c0_11 = arith.constant 0 : index
      %c0_12 = arith.constant 0 : index
      %13 = vector.load %arg7[%c0_11, %c0_12] : memref<128x128xf32, #tpu.memory_space<vmem>>, vector<128x128xf32>
      tpu.vector_store %arg7[%c0_11, %c0_12], %12 {strides = array<i32>} : memref<128x128xf32, #tpu.memory_space<vmem>>, vector<128x128xf32>,
    } else {
    }
    %c0 = arith.constant 0 : index
    %c0_1 = arith.constant 0 : index
    %3 = vector.load %arg7[%c0, %c0_1] : memref<128x128xf32, #tpu.memory_space<vmem>>, vector<128x128xf32>
    %c0_2 = arith.constant 0 : index
    %c0_3 = arith.constant 0 : index
    %4 = vector.load %arg3[%c0_2, %c0_3] : memref<128x128xbf16, #tpu.memory_space<vmem>>, vector<128x128xbf16>
    %c0_4 = arith.constant 0 : index
    %c0_5 = arith.constant 0 : index
    %5 = vector.load %arg4[%c0_4, %c0_5] : memref<128x128xbf16, #tpu.memory_space<vmem>>, vector<128x128xbf16>
    %cst = arith.constant dense<0.000000e+00> : vector<128x128xf32>
    %6 = tpu.matmul %4, %5, %cst {dimension_numbers = #tpu.dot_dimension_numbers<[1], [0], [0], [1], [0, 0, 1, 1], [], []>} : vector<128x128xbf16>, vector<128x128xbf16>, vector<128x128xf32> -> vector<128x128xf32>
    %7 = arith.addf %3, %6 : vector<128x128xf32>
    %c0_6 = arith.constant 0 : index
    %c0_7 = arith.constant 0 : index
    %8 = vector.load %arg7[%c0_6, %c0_7] : memref<128x128xf32, #tpu.memory_space<vmem>>, vector<128x128xf32>
    tpu.vector_store %arg7[%c0_6, %c0_7], %7 {strides = array<i32>} : memref<128x128xf32, #tpu.memory_space<vmem>>, vector<128x128xf32>,
    %c0_i32_8 = arith.constant 0 : i32
    %9 = arith.cmpi eq, %arg2, %c0_i32_8 : i32
    %10 = arith.extui %9 : i1 to i32
    %c0_i32_9 = arith.constant 0 : i32
    %11 = arith.cmpi ne, %10, %c0_i32_9 : i32
    scf.if %11 {
      %c0_10 = arith.constant 0 : index
      %c0_11 = arith.constant 0 : index
      %12 = vector.load %arg7[%c0_10, %c0_11] : memref<128x128xf32, #tpu.memory_space<vmem>>, vector<128x128xf32>
      %c0_12 = arith.constant 0 : index
      %c0_13 = arith.constant 0 : index
      %13 = vector.load %arg5[%c0_12, %c0_13] : memref<1x128xf32, #tpu.memory_space<vmem>>, vector<1x128xf32>
      %14 = vector.broadcast %13 : vector<1x128xf32> to vector<128x128xf32>
      %15 = arith.addf %12, %14 : vector<128x128xf32>
      %cst_14 = arith.constant 0.000000e+00 : f32
      %16 = vector.broadcast %cst_14 : f32 to vector<128x128xf32>
      %17 = arith.cmpf oge, %15, %16 : vector<128x128xf32>
      %cst_15 = arith.constant 0.00999999977 : f32
      %18 = vector.broadcast %cst_15 : f32 to vector<128x128xf32>
      %19 = arith.mulf %18, %15 : vector<128x128xf32>
      %20 = arith.select %17, %15, %19 : vector<128x128xi1>, vector<128x128xf32>
      %21 = arith.truncf %20 : vector<128x128xf32> to vector<128x128xbf16>
      %c0_16 = arith.constant 0 : index
      %c0_17 = arith.constant 0 : index
      %22 = vector.load %arg6[%c0_16, %c0_17] : memref<128x128xbf16, #tpu.memory_space<vmem>>, vector<128x128xbf16>
      tpu.vector_store %arg6[%c0_16, %c0_17], %21 {strides = array<i32>} : memref<128x128xbf16, #tpu.memory_space<vmem>>, vector<128x128xbf16>,
    } else {
    }
    return
  }
  func.func @transform_0(%arg0: i32, %arg1: i32, %arg2: i32) -> (i32, i32) {
    %c0_i32 = arith.constant 0 : i32
    return %arg0, %arg2 : i32, i32
  }
  func.func @transform_1(%arg0: i32, %arg1: i32, %arg2: i32) -> (i32, i32) {
    %c0_i32 = arith.constant 0 : i32
    return %arg2, %arg1 : i32, i32
  }
  func.func @transform_2(%arg0: i32, %arg1: i32, %arg2: i32) -> (i32, i32) {
    %c0_i32 = arith.constant 0 : i32
    %c0_i32_0 = arith.constant 0 : i32
    return %c0_i32, %arg1 : i32, i32
  }
  func.func @transform_3(%arg0: i32, %arg1: i32, %arg2: i32) -> (i32, i32) {
    %c0_i32 = arith.constant 0 : i32
    return %arg0, %arg1 : i32, i32
  }
}

module attributes {stable_mosaic.version = 11 : i64} {
  func.func @_matmul_bias_act_kernel(%arg0: i32, %arg1: i32, %arg2: i32, %arg3: memref<32x512xbf16, #tpu.memory_space<vmem>>, %arg4: memref<512x128xbf16, #tpu.memory_space<vmem>>, %arg5: memref<1x128xf32, #tpu.memory_space<vmem>>, %arg6: memref<32x128xbf16, #tpu.memory_space<vmem>>, %arg7: memref<32x128xf32, #tpu.memory_space<vmem>>) attributes {dimension_semantics = [#tpu.dimension_semantics<parallel>, #tpu.dimension_semantics<parallel>, #tpu.dimension_semantics<arbitrary>], iteration_bounds = array<i64: 1, 1, 2>, scalar_prefetch = 0 : i64, scratch_operands = 1 : i64, tpu.core_type = #tpu.core_type<tc>, window_params = [{transform_indices = @transform_0, window_bounds = array<i64: 32, 512>}, {transform_indices = @transform_1, window_bounds = array<i64: 512, 128>}, {transform_indices = @transform_2, window_bounds = array<i64: 1, 128>}, {transform_indices = @transform_3, window_bounds = array<i64: 32, 128>}]} {
    %c0_i32 = arith.constant 0 : i32
    %0 = arith.cmpi eq, %arg2, %c0_i32 : i32
    %1 = arith.extui %0 : i1 to i32
    %c0_i32_0 = arith.constant 0 : i32
    %2 = arith.cmpi ne, %1, %c0_i32_0 : i32
    scf.if %2 {
      %cst_9 = arith.constant 0.000000e+00 : f32
      %12 = vector.broadcast %cst_9 : f32 to vector<32x128xf32>
      %c0_10 = arith.constant 0 : index
      %c0_11 = arith.constant 0 : index
      %13 = vector.load %arg7[%c0_10, %c0_11] : memref<32x128xf32, #tpu.memory_space<vmem>>, vector<32x128xf32>
      tpu.vector_store %arg7[%c0_10, %c0_11], %12 {strides = array<i32>} : memref<32x128xf32, #tpu.memory_space<vmem>>, vector<32x128xf32>,
    } else {
    }
    %c0 = arith.constant 0 : index
    %c0_1 = arith.constant 0 : index
    %3 = vector.load %arg7[%c0, %c0_1] : memref<32x128xf32, #tpu.memory_space<vmem>>, vector<32x128xf32>
    %c0_2 = arith.constant 0 : index
    %c0_3 = arith.constant 0 : index
    %4 = vector.load %arg3[%c0_2, %c0_3] : memref<32x512xbf16, #tpu.memory_space<vmem>>, vector<32x512xbf16>
    %c0_4 = arith.constant 0 : index
    %c0_5 = arith.constant 0 : index
    %5 = vector.load %arg4[%c0_4, %c0_5] : memref<512x128xbf16, #tpu.memory_space<vmem>>, vector<512x128xbf16>
    %cst = arith.constant dense<0.000000e+00> : vector<32x128xf32>
    %6 = tpu.matmul %4, %5, %cst {dimension_numbers = #tpu.dot_dimension_numbers<[1], [0], [0], [1], [0, 0, 1, 1], [], []>} : vector<32x512xbf16>, vector<512x128xbf16>, vector<32x128xf32> -> vector<32x128xf32>
    %7 = arith.addf %3, %6 : vector<32x128xf32>
    %c0_6 = arith.constant 0 : index
    %c0_7 = arith.constant 0 : index
    %8 = vector.load %arg7[%c0_6, %c0_7] : memref<32x128xf32, #tpu.memory_space<vmem>>, vector<32x128xf32>
    tpu.vector_store %arg7[%c0_6, %c0_7], %7 {strides = array<i32>} : memref<32x128xf32, #tpu.memory_space<vmem>>, vector<32x128xf32>,
    %c1_i32 = arith.constant 1 : i32
    %9 = arith.cmpi eq, %arg2, %c1_i32 : i32
    %10 = arith.extui %9 : i1 to i32
    %c0_i32_8 = arith.constant 0 : i32
    %11 = arith.cmpi ne, %10, %c0_i32_8 : i32
    scf.if %11 {
      %c0_9 = arith.constant 0 : index
      %c0_10 = arith.constant 0 : index
      %12 = vector.load %arg7[%c0_9, %c0_10] : memref<32x128xf32, #tpu.memory_space<vmem>>, vector<32x128xf32>
      %c0_11 = arith.constant 0 : index
      %c0_12 = arith.constant 0 : index
      %13 = vector.load %arg5[%c0_11, %c0_12] : memref<1x128xf32, #tpu.memory_space<vmem>>, vector<1x128xf32>
      %14 = vector.broadcast %13 : vector<1x128xf32> to vector<32x128xf32>
      %15 = arith.addf %12, %14 : vector<32x128xf32>
      %cst_13 = arith.constant 0.000000e+00 : f32
      %16 = vector.broadcast %cst_13 : f32 to vector<32x128xf32>
      %17 = arith.cmpf oge, %15, %16 : vector<32x128xf32>
      %cst_14 = arith.constant 0.00999999977 : f32
      %18 = vector.broadcast %cst_14 : f32 to vector<32x128xf32>
      %19 = arith.mulf %18, %15 : vector<32x128xf32>
      %20 = arith.select %17, %15, %19 : vector<32x128xi1>, vector<32x128xf32>
      %21 = arith.truncf %20 : vector<32x128xf32> to vector<32x128xbf16>
      %c0_15 = arith.constant 0 : index
      %c0_16 = arith.constant 0 : index
      %22 = vector.load %arg6[%c0_15, %c0_16] : memref<32x128xbf16, #tpu.memory_space<vmem>>, vector<32x128xbf16>
      tpu.vector_store %arg6[%c0_15, %c0_16], %21 {strides = array<i32>} : memref<32x128xbf16, #tpu.memory_space<vmem>>, vector<32x128xbf16>,
    } else {
    }
    return
  }
  func.func @transform_0(%arg0: i32, %arg1: i32, %arg2: i32) -> (i32, i32) {
    %c0_i32 = arith.constant 0 : i32
    return %arg0, %arg2 : i32, i32
  }
  func.func @transform_1(%arg0: i32, %arg1: i32, %arg2: i32) -> (i32, i32) {
    %c0_i32 = arith.constant 0 : i32
    return %arg2, %arg1 : i32, i32
  }
  func.func @transform_2(%arg0: i32, %arg1: i32, %arg2: i32) -> (i32, i32) {
    %c0_i32 = arith.constant 0 : i32
    %c0_i32_0 = arith.constant 0 : i32
    return %c0_i32, %arg1 : i32, i32
  }
  func.func @transform_3(%arg0: i32, %arg1: i32, %arg2: i32) -> (i32, i32) {
    %c0_i32 = arith.constant 0 : i32
    return %arg0, %arg1 : i32, i32
  }
}

module attributes {stable_mosaic.version = 11 : i64} {
  func.func @_matmul_bias_act_kernel(%arg0: i32, %arg1: i32, %arg2: i32, %arg3: memref<8x512xbf16, #tpu.memory_space<vmem>>, %arg4: memref<512x128xbf16, #tpu.memory_space<vmem>>, %arg5: memref<1x128xf32, #tpu.memory_space<vmem>>, %arg6: memref<8x128xf32, #tpu.memory_space<vmem>>, %arg7: memref<8x128xf32, #tpu.memory_space<vmem>>) attributes {dimension_semantics = [#tpu.dimension_semantics<parallel>, #tpu.dimension_semantics<parallel>, #tpu.dimension_semantics<arbitrary>], iteration_bounds = array<i64: 1, 1, 4>, scalar_prefetch = 0 : i64, scratch_operands = 1 : i64, tpu.core_type = #tpu.core_type<tc>, window_params = [{transform_indices = @transform_0, window_bounds = array<i64: 8, 512>}, {transform_indices = @transform_1, window_bounds = array<i64: 512, 128>}, {transform_indices = @transform_2, window_bounds = array<i64: 1, 128>}, {transform_indices = @transform_3, window_bounds = array<i64: 8, 128>}]} {
    %c0_i32 = arith.constant 0 : i32
    %0 = arith.cmpi eq, %arg2, %c0_i32 : i32
    %1 = arith.extui %0 : i1 to i32
    %c0_i32_0 = arith.constant 0 : i32
    %2 = arith.cmpi ne, %1, %c0_i32_0 : i32
    scf.if %2 {
      %cst_9 = arith.constant 0.000000e+00 : f32
      %12 = vector.broadcast %cst_9 : f32 to vector<8x128xf32>
      %c0_10 = arith.constant 0 : index
      %c0_11 = arith.constant 0 : index
      %13 = vector.load %arg7[%c0_10, %c0_11] : memref<8x128xf32, #tpu.memory_space<vmem>>, vector<8x128xf32>
      tpu.vector_store %arg7[%c0_10, %c0_11], %12 {strides = array<i32>} : memref<8x128xf32, #tpu.memory_space<vmem>>, vector<8x128xf32>,
    } else {
    }
    %c0 = arith.constant 0 : index
    %c0_1 = arith.constant 0 : index
    %3 = vector.load %arg7[%c0, %c0_1] : memref<8x128xf32, #tpu.memory_space<vmem>>, vector<8x128xf32>
    %c0_2 = arith.constant 0 : index
    %c0_3 = arith.constant 0 : index
    %4 = vector.load %arg3[%c0_2, %c0_3] : memref<8x512xbf16, #tpu.memory_space<vmem>>, vector<8x512xbf16>
    %c0_4 = arith.constant 0 : index
    %c0_5 = arith.constant 0 : index
    %5 = vector.load %arg4[%c0_4, %c0_5] : memref<512x128xbf16, #tpu.memory_space<vmem>>, vector<512x128xbf16>
    %cst = arith.constant dense<0.000000e+00> : vector<8x128xf32>
    %6 = tpu.matmul %4, %5, %cst {dimension_numbers = #tpu.dot_dimension_numbers<[1], [0], [0], [1], [0, 0, 1, 1], [], []>} : vector<8x512xbf16>, vector<512x128xbf16>, vector<8x128xf32> -> vector<8x128xf32>
    %7 = arith.addf %3, %6 : vector<8x128xf32>
    %c0_6 = arith.constant 0 : index
    %c0_7 = arith.constant 0 : index
    %8 = vector.load %arg7[%c0_6, %c0_7] : memref<8x128xf32, #tpu.memory_space<vmem>>, vector<8x128xf32>
    tpu.vector_store %arg7[%c0_6, %c0_7], %7 {strides = array<i32>} : memref<8x128xf32, #tpu.memory_space<vmem>>, vector<8x128xf32>,
    %c3_i32 = arith.constant 3 : i32
    %9 = arith.cmpi eq, %arg2, %c3_i32 : i32
    %10 = arith.extui %9 : i1 to i32
    %c0_i32_8 = arith.constant 0 : i32
    %11 = arith.cmpi ne, %10, %c0_i32_8 : i32
    scf.if %11 {
      %c0_9 = arith.constant 0 : index
      %c0_10 = arith.constant 0 : index
      %12 = vector.load %arg7[%c0_9, %c0_10] : memref<8x128xf32, #tpu.memory_space<vmem>>, vector<8x128xf32>
      %c0_11 = arith.constant 0 : index
      %c0_12 = arith.constant 0 : index
      %13 = vector.load %arg5[%c0_11, %c0_12] : memref<1x128xf32, #tpu.memory_space<vmem>>, vector<1x128xf32>
      %14 = vector.broadcast %13 : vector<1x128xf32> to vector<8x128xf32>
      %15 = arith.addf %12, %14 : vector<8x128xf32>
      %c0_13 = arith.constant 0 : index
      %c0_14 = arith.constant 0 : index
      %16 = vector.load %arg6[%c0_13, %c0_14] : memref<8x128xf32, #tpu.memory_space<vmem>>, vector<8x128xf32>
      tpu.vector_store %arg6[%c0_13, %c0_14], %15 {strides = array<i32>} : memref<8x128xf32, #tpu.memory_space<vmem>>, vector<8x128xf32>,
    } else {
    }
    return
  }
  func.func @transform_0(%arg0: i32, %arg1: i32, %arg2: i32) -> (i32, i32) {
    %c0_i32 = arith.constant 0 : i32
    return %arg0, %arg2 : i32, i32
  }
  func.func @transform_1(%arg0: i32, %arg1: i32, %arg2: i32) -> (i32, i32) {
    %c0_i32 = arith.constant 0 : i32
    return %arg2, %arg1 : i32, i32
  }
  func.func @transform_2(%arg0: i32, %arg1: i32, %arg2: i32) -> (i32, i32) {
    %c0_i32 = arith.constant 0 : i32
    %c0_i32_0 = arith.constant 0 : i32
    return %c0_i32, %arg1 : i32, i32
  }
  func.func @transform_3(%arg0: i32, %arg1: i32, %arg2: i32) -> (i32, i32) {
    %c0_i32 = arith.constant 0 : i32
    return %arg0, %arg1 : i32, i32
  }
}

module attributes {stable_mosaic.version = 11 : i64} {
  func.func @_matmul_bias_act_kernel(%arg0: i32, %arg1: i32, %arg2: i32, %arg3: memref<32x128xbf16, #tpu.memory_space<vmem>>, %arg4: memref<128x128xbf16, #tpu.memory_space<vmem>>, %arg5: memref<1x128xf32, #tpu.memory_space<vmem>>, %arg6: memref<32x128xf32, #tpu.memory_space<vmem>>, %arg7: memref<32x128xf32, #tpu.memory_space<vmem>>) attributes {dimension_semantics = [#tpu.dimension_semantics<parallel>, #tpu.dimension_semantics<parallel>, #tpu.dimension_semantics<arbitrary>], iteration_bounds = array<i64: 1, 1, 9>, scalar_prefetch = 0 : i64, scratch_operands = 1 : i64, tpu.core_type = #tpu.core_type<tc>, window_params = [{transform_indices = @transform_0, window_bounds = array<i64: 32, 128>}, {transform_indices = @transform_1, window_bounds = array<i64: 128, 128>}, {transform_indices = @transform_2, window_bounds = array<i64: 1, 128>}, {transform_indices = @transform_3, window_bounds = array<i64: 32, 128>}]} {
    %c0_i32 = arith.constant 0 : i32
    %0 = arith.cmpi eq, %arg2, %c0_i32 : i32
    %1 = arith.extui %0 : i1 to i32
    %c0_i32_0 = arith.constant 0 : i32
    %2 = arith.cmpi ne, %1, %c0_i32_0 : i32
    scf.if %2 {
      %cst_9 = arith.constant 0.000000e+00 : f32
      %12 = vector.broadcast %cst_9 : f32 to vector<32x128xf32>
      %c0_10 = arith.constant 0 : index
      %c0_11 = arith.constant 0 : index
      %13 = vector.load %arg7[%c0_10, %c0_11] : memref<32x128xf32, #tpu.memory_space<vmem>>, vector<32x128xf32>
      tpu.vector_store %arg7[%c0_10, %c0_11], %12 {strides = array<i32>} : memref<32x128xf32, #tpu.memory_space<vmem>>, vector<32x128xf32>,
    } else {
    }
    %c0 = arith.constant 0 : index
    %c0_1 = arith.constant 0 : index
    %3 = vector.load %arg7[%c0, %c0_1] : memref<32x128xf32, #tpu.memory_space<vmem>>, vector<32x128xf32>
    %c0_2 = arith.constant 0 : index
    %c0_3 = arith.constant 0 : index
    %4 = vector.load %arg3[%c0_2, %c0_3] : memref<32x128xbf16, #tpu.memory_space<vmem>>, vector<32x128xbf16>
    %c0_4 = arith.constant 0 : index
    %c0_5 = arith.constant 0 : index
    %5 = vector.load %arg4[%c0_4, %c0_5] : memref<128x128xbf16, #tpu.memory_space<vmem>>, vector<128x128xbf16>
    %cst = arith.constant dense<0.000000e+00> : vector<32x128xf32>
    %6 = tpu.matmul %4, %5, %cst {dimension_numbers = #tpu.dot_dimension_numbers<[1], [0], [0], [1], [0, 0, 1, 1], [], []>} : vector<32x128xbf16>, vector<128x128xbf16>, vector<32x128xf32> -> vector<32x128xf32>
    %7 = arith.addf %3, %6 : vector<32x128xf32>
    %c0_6 = arith.constant 0 : index
    %c0_7 = arith.constant 0 : index
    %8 = vector.load %arg7[%c0_6, %c0_7] : memref<32x128xf32, #tpu.memory_space<vmem>>, vector<32x128xf32>
    tpu.vector_store %arg7[%c0_6, %c0_7], %7 {strides = array<i32>} : memref<32x128xf32, #tpu.memory_space<vmem>>, vector<32x128xf32>,
    %c8_i32 = arith.constant 8 : i32
    %9 = arith.cmpi eq, %arg2, %c8_i32 : i32
    %10 = arith.extui %9 : i1 to i32
    %c0_i32_8 = arith.constant 0 : i32
    %11 = arith.cmpi ne, %10, %c0_i32_8 : i32
    scf.if %11 {
      %c0_9 = arith.constant 0 : index
      %c0_10 = arith.constant 0 : index
      %12 = vector.load %arg7[%c0_9, %c0_10] : memref<32x128xf32, #tpu.memory_space<vmem>>, vector<32x128xf32>
      %c0_11 = arith.constant 0 : index
      %c0_12 = arith.constant 0 : index
      %13 = vector.load %arg5[%c0_11, %c0_12] : memref<1x128xf32, #tpu.memory_space<vmem>>, vector<1x128xf32>
      %14 = vector.broadcast %13 : vector<1x128xf32> to vector<32x128xf32>
      %15 = arith.addf %12, %14 : vector<32x128xf32>
      %c0_13 = arith.constant 0 : index
      %c0_14 = arith.constant 0 : index
      %16 = vector.load %arg6[%c0_13, %c0_14] : memref<32x128xf32, #tpu.memory_space<vmem>>, vector<32x128xf32>
      tpu.vector_store %arg6[%c0_13, %c0_14], %15 {strides = array<i32>} : memref<32x128xf32, #tpu.memory_space<vmem>>, vector<32x128xf32>,
    } else {
    }
    return
  }
  func.func @transform_0(%arg0: i32, %arg1: i32, %arg2: i32) -> (i32, i32) {
    %c0_i32 = arith.constant 0 : i32
    return %arg0, %arg2 : i32, i32
  }
  func.func @transform_1(%arg0: i32, %arg1: i32, %arg2: i32) -> (i32, i32) {
    %c0_i32 = arith.constant 0 : i32
    return %arg2, %arg1 : i32, i32
  }
  func.func @transform_2(%arg0: i32, %arg1: i32, %arg2: i32) -> (i32, i32) {
    %c0_i32 = arith.constant 0 : i32
    %c0_i32_0 = arith.constant 0 : i32
    return %c0_i32, %arg1 : i32, i32
  }
  func.func @transform_3(%arg0: i32, %arg1: i32, %arg2: i32) -> (i32, i32) {
    %c0_i32 = arith.constant 0 : i32
    return %arg0, %arg1 : i32, i32
  }
}

</mosaic_0001>

<bundles_post_ra>
// kernel: _lambda_.4
= control target key start
LH: loop header
LB: loop body
LE: loop exit
PB: predicated region body
PF: predicated region fallthrough
CT: control target
= control target key end

     0   :  { %s647_s1 = inlined_call_operand.vmem [shape: bf16[128,128], index: 1, kind: input, shape index: {}]   ;;  %s648_s2 = inlined_call_operand.vmem [shape: f32[1,128], index: 2, kind: input, shape index: {}]   ;;  %s649_s0 = inlined_call_operand.vmem [shape: bf16[128,128], index: 0, kind: input, shape index: {}]   ;;  %s650_s3 = inlined_call_operand.vmem [shape: bf16[128,128], index: 3, kind: output, shape index: {}]  }
   0x1   :  { %v461_v0 = vld [vmem:[%s647_s1 + $0x38] sm:$0xff]  ;;  %v460_v1 = vld [vmem:[%s647_s1 + $0x30] sm:$0xff]  ;;  %v459_v2 = vld [vmem:[%s647_s1 + $0x28] sm:$0xff] }
   0x2   :  { %178 = vmatpush.bf16.msra.mxu0 %v461_v0  ;;  %509 = vmatpush.bf16.msra.mxu1 %v461_v0  ;;  %v458_v3 = vld [vmem:[%s647_s1 + $0x20] sm:$0xff]  ;;  %v457_v4 = vld [vmem:[%s647_s1 + $0x18] sm:$0xff]  ;;  %v456_v5 = vld [vmem:[%s647_s1 + $0x10] sm:$0xff] }
   0x3   :  { %510 = vmatpush.bf16.msra.mxu2 %v461_v0  ;;  %511 = vmatpush.bf16.msra.mxu3 %v461_v0  ;;  %v455_v6 = vld [vmem:[%s647_s1 + $0x8] sm:$0xff]  ;;  %v454_v7 = vld [vmem:[%s647_s1] sm:$0xff]  ;;  %v448_v9 = vld [vmem:[%s649_s0 + $0x10] sm:$0xff] }
   0x4   :  { %v446_v8 = vld [vmem:[%s649_s0] sm:$0xff]  ;;  %v452_v11 = vld [vmem:[%s649_s0 + $0x30] sm:$0xff]  ;;  %v447_v12 = vld [vmem:[%s649_s0 + $0x8] sm:$0xff] }
   0x5   :  { %v450_v10 = vld [vmem:[%s649_s0 + $0x20] sm:$0xff]  ;;  %v449_v13 = vld [vmem:[%s649_s0 + $0x18] sm:$0xff]  ;;  %v451_v14 = vld [vmem:[%s649_s0 + $0x28] sm:$0xff] }
   0x6   :  { %179 = vmatpush.bf16.msra.mxu0 %v460_v1  ;;  %512 = vmatpush.bf16.msra.mxu1 %v460_v1  ;;  %v453_v15 = vld [vmem:[%s649_s0 + $0x38] sm:$0xff]  ;;  %v605_v18 = vld [vmem:[%s648_s2] ss:$0 sm:$0xff] }
   0x7   :  { %513 = vmatpush.bf16.msra.mxu2 %v460_v1  ;;  %514 = vmatpush.bf16.msra.mxu3 %v460_v1 }
   0xa   :  { %180 = vmatpush.bf16.msra.mxu0 %v459_v2  ;;  %515 = vmatpush.bf16.msra.mxu1 %v459_v2 }
   0xb   :  { %516 = vmatpush.bf16.msra.mxu2 %v459_v2  ;;  %517 = vmatpush.bf16.msra.mxu3 %v459_v2 }
   0xe   :  { %181 = vmatpush.bf16.msra.mxu0 %v458_v3  ;;  %518 = vmatpush.bf16.msra.mxu1 %v458_v3 }
   0xf   :  { %519 = vmatpush.bf16.msra.mxu2 %v458_v3  ;;  %520 = vmatpush.bf16.msra.mxu3 %v458_v3 }
  0x12   :  { %182 = vmatpush.bf16.msra.mxu0 %v457_v4  ;;  %521 = vmatpush.bf16.msra.mxu1 %v457_v4 }
  0x13   :  { %522 = vmatpush.bf16.msra.mxu2 %v457_v4  ;;  %523 = vmatpush.bf16.msra.mxu3 %v457_v4 }
  0x16   :  { %183 = vmatpush.bf16.msra.mxu0 %v456_v5  ;;  %524 = vmatpush.bf16.msra.mxu1 %v456_v5 }
  0x17   :  { %525 = vmatpush.bf16.msra.mxu2 %v456_v5  ;;  %526 = vmatpush.bf16.msra.mxu3 %v456_v5 }
  0x1a   :  { %184 = vmatpush.bf16.msra.mxu0 %v455_v6  ;;  %527 = vmatpush.bf16.msra.mxu1 %v455_v6 }
  0x1b   :  { %528 = vmatpush.bf16.msra.mxu2 %v455_v6  ;;  %529 = vmatpush.bf16.msra.mxu3 %v455_v6 }
  0x1e   :  { %185 = vmatpush.bf16.msra.mxu0 %v454_v7  ;;  %530 = vmatpush.bf16.msra.mxu1 %v454_v7 }
  0x1f   :  { %531 = vmatpush.bf16.msra.mxu2 %v454_v7  ;;  %532 = vmatpush.bf16.msra.mxu3 %v454_v7 }
  0x21   :  { %186 = vmatmul.bf16.vlgmr.msra.gmra.mxu0 %v446_v8  ;;  %196 = vmatmul.bf16.vlgmr.msra.gmra.mxu1 %v448_v9 }
  0x22   :  { %206 = vmatmul.bf16.vlgmr.msra.gmra.mxu2 %v450_v10  ;;  %216 = vmatmul.bf16.vlgmr.msra.gmra.mxu3 %v452_v11 }
  0x31   :  { %191 = vmatmul.bf16.gmra.mxu0 %v447_v12  ;;  %201 = vmatmul.bf16.gmra.mxu1 %v449_v13 }
  0x32   :  { %211 = vmatmul.bf16.gmra.mxu2 %v451_v14  ;;  %221 = vmatmul.bf16.gmra.mxu3 %v453_v15 }
  0x9e   :  { %v187_v16 = vpop.f32.mrf.mxu0  ;;  %v197_v17 = vpop.f32.mrf.mxu1 }
  0x9f   :  { %v282_v19 = vadd.f32 %v605_v18, %v187_v16  ;;  %v286_v20 = vadd.f32 %v605_v18, %v197_v17 }
  0xa1   :  { %v314_v25 = vmul.f32 0.01, %v282_v19  ;;  %v318_v26 = vmul.f32 0.01, %v286_v20  ;;  %vm298_vm0 = vcmp.ge.f32.partialorder %v282_v19, 0.0  ;;  %vm302_vm1 = vcmp.ge.f32.partialorder %v286_v20, 0.0 }
  0xa3   :  { %v330_v33 = vsel %vm298_vm0, %v282_v19, %v314_v25  ;;  %v334_v34 = vsel %vm302_vm1, %v286_v20, %v318_v26 }
  0xa5   :  { %v207_v21 = vpop.f32.mrf.mxu2  ;;  %v217_v22 = vpop.f32.mrf.mxu3 }
  0xa6   :  { %v189_v23 = vpop.f32.mrf.mxu0  ;;  %v199_v24 = vpop.f32.mrf.mxu1  ;;  %v290_v31 = vadd.f32 %v605_v18, %v207_v21  ;;  %v294_v32 = vadd.f32 %v605_v18, %v217_v22 }
  0xa7   :  { %v283_v27 = vadd.f32 %v605_v18, %v189_v23  ;;  %v287_v28 = vadd.f32 %v605_v18, %v199_v24 }
  0xa8   :  { %v322_v41 = vmul.f32 0.01, %v290_v31  ;;  %v326_v42 = vmul.f32 0.01, %v294_v32  ;;  %vm306_vm4 = vcmp.ge.f32.partialorder %v290_v31, 0.0  ;;  %vm310_vm5 = vcmp.ge.f32.partialorder %v294_v32, 0.0 }
  0xa9   :  { %vm299_vm2 = vcmp.ge.f32.partialorder %v283_v27, 0.0  ;;  %v315_v29 = vmul.f32 0.01, %v283_v27  ;;  %vm303_vm3 = vcmp.ge.f32.partialorder %v287_v28, 0.0  ;;  %v319_v30 = vmul.f32 0.01, %v287_v28 }
  0xaa   :  { %v338_v49 = vsel %vm306_vm4, %v290_v31, %v322_v41  ;;  %v342_v50 = vsel %vm310_vm5, %v294_v32, %v326_v42 }
  0xab   :  { %v331_v35 = vsel %vm299_vm2, %v283_v27, %v315_v29  ;;  %v335_v36 = vsel %vm303_vm3, %v287_v28, %v319_v30 }
  0xac   :  { %v465_v37 = vpack.c.bf16 %v331_v35, %v330_v33  ;;  %v475_v38 = vpack.c.bf16 %v335_v36, %v334_v34 }
  0xad   :  { %v209_v39 = vpop.f32.mrf.mxu2  ;;  %v219_v40 = vpop.f32.mrf.mxu3 }
  0xae   :  { %466 = vst [vmem:[%s650_s3] sm:$0xff] %v465_v37   ;;  %v291_v43 = vadd.f32 %v605_v18, %v209_v39  ;;  %v295_v44 = vadd.f32 %v605_v18, %v219_v40  ;;  %v192_v45 = vpop.f32.mrf.mxu0  ;;  %v202_v46 = vpop.f32.mrf.mxu1 }
  0xaf   :  { %503 = vst [vmem:[%s650_s3 + $0x10] sm:$0xff] %v475_v38   ;;  %v284_v55 = vadd.f32 %v605_v18, %v192_v45  ;;  %v288_v56 = vadd.f32 %v605_v18, %v202_v46 }
  0xb0   :  { %vm307_vm6 = vcmp.ge.f32.partialorder %v291_v43, 0.0  ;;  %v323_v47 = vmul.f32 0.01, %v291_v43  ;;  %vm311_vm7 = vcmp.ge.f32.partialorder %v295_v44, 0.0  ;;  %v327_v48 = vmul.f32 0.01, %v295_v44 }
  0xb1   :  { %v316_v61 = vmul.f32 0.01, %v284_v55  ;;  %v320_v62 = vmul.f32 0.01, %v288_v56  ;;  %vm300_vm8 = vcmp.ge.f32.partialorder %v284_v55, 0.0  ;;  %vm304_vm9 = vcmp.ge.f32.partialorder %v288_v56, 0.0 }
  0xb2   :  { %v339_v51 = vsel %vm307_vm6, %v291_v43, %v323_v47  ;;  %v343_v52 = vsel %vm311_vm7, %v295_v44, %v327_v48 }
  0xb3   :  { %v485_v53 = vpack.c.bf16 %v339_v51, %v338_v49  ;;  %v495_v54 = vpack.c.bf16 %v343_v52, %v342_v50  ;;  %v332_v5 = vsel %vm300_vm8, %v284_v55, %v316_v61  ;;  %v336_v6 = vsel %vm304_vm9, %v288_v56, %v320_v62 }
  0xb5   :  { %505 = vst [vmem:[%s650_s3 + $0x20] sm:$0xff] %v485_v53   ;;  %v212_v57 = vpop.f32.mrf.mxu2  ;;  %v222_v58 = vpop.f32.mrf.mxu3 }
  0xb6   :  { %507 = vst [vmem:[%s650_s3 + $0x30] sm:$0xff] %v495_v54   ;;  %v194_v59 = vpop.f32.mrf.mxu0  ;;  %v204_v60 = vpop.f32.mrf.mxu1  ;;  %v292_v3 = vadd.f32 %v605_v18, %v212_v57  ;;  %v296_v4 = vadd.f32 %v605_v18, %v222_v58 }
  0xb7   :  { %v285_v63 = vadd.f32 %v605_v18, %v194_v59  ;;  %v289_v0 = vadd.f32 %v605_v18, %v204_v60 }
  0xb8   :  { %v324_v13 = vmul.f32 0.01, %v292_v3  ;;  %v328_v14 = vmul.f32 0.01, %v296_v4  ;;  %vm308_vm12 = vcmp.ge.f32.partialorder %v292_v3, 0.0  ;;  %vm312_vm13 = vcmp.ge.f32.partialorder %v296_v4, 0.0 }
  0xb9   :  { %vm301_vm10 = vcmp.ge.f32.partialorder %v285_v63, 0.0  ;;  %v317_v1 = vmul.f32 0.01, %v285_v63  ;;  %vm305_vm11 = vcmp.ge.f32.partialorder %v289_v0, 0.0  ;;  %v321_v2 = vmul.f32 0.01, %v289_v0 }
  0xba   :  { %v340_v20 = vsel %vm308_vm12, %v292_v3, %v324_v13  ;;  %v344_v21 = vsel %vm312_vm13, %v296_v4, %v328_v14 }
  0xbb   :  { %v333_v7 = vsel %vm301_vm10, %v285_v63, %v317_v1  ;;  %v337_v8 = vsel %vm305_vm11, %v289_v0, %v321_v2 }
  0xbc   :  { %v470_v9 = vpack.c.bf16 %v333_v7, %v332_v5  ;;  %v480_v10 = vpack.c.bf16 %v337_v8, %v336_v6 }
  0xbd   :  { %v214_v11 = vpop.f32.mrf.mxu2  ;;  %v224_v12 = vpop.f32.mrf.mxu3 }
  0xbe   :  { %502 = vst [vmem:[%s650_s3 + $0x8] sm:$0xff] %v470_v9   ;;  %v293_v15 = vadd.f32 %v605_v18, %v214_v11  ;;  %v297_v16 = vadd.f32 %v605_v18, %v224_v12 }
  0xbf   :  { %504 = vst [vmem:[%s650_s3 + $0x18] sm:$0xff] %v480_v10  }
  0xc0   :  { %vm309_vm14 = vcmp.ge.f32.partialorder %v293_v15, 0.0  ;;  %v325_v17 = vmul.f32 0.01, %v293_v15  ;;  %vm313_vm15 = vcmp.ge.f32.partialorder %v297_v16, 0.0  ;;  %v329_v19 = vmul.f32 0.01, %v297_v16 }
  0xc2   :  { %v341_v22 = vsel %vm309_vm14, %v293_v15, %v325_v17  ;;  %v345_v23 = vsel %vm313_vm15, %v297_v16, %v329_v19 }
  0xc3   :  { %v490_v24 = vpack.c.bf16 %v341_v22, %v340_v20  ;;  %v500_v25 = vpack.c.bf16 %v345_v23, %v344_v21 }
  0xc5   :  { %506 = vst [vmem:[%s650_s3 + $0x28] sm:$0xff] %v490_v24  }
  0xc6   :  { %508 = vst [vmem:[%s650_s3 + $0x38] sm:$0xff] %v500_v25  }

// kernel: _lambda_.5
= control target key start
LH: loop header
LB: loop body
LE: loop exit
PB: predicated region body
PF: predicated region fallthrough
CT: control target
= control target key end

     0   :  { %s1166_s12 = smov 0   ;;  %s1168_s13 = smov 0   ;;  %s1294_s0 = inlined_call_operand.vmem [shape: bf16[32,1024], index: 0, kind: input, shape index: {}]   ;;  %s1295_s1 = inlined_call_operand.vmem [shape: bf16[1024,128], index: 1, kind: input, shape index: {}]   ;;  %s1296_s2 = inlined_call_operand.vmem [shape: f32[1,128], index: 2, kind: input, shape index: {}]   ;;  %s1297_s3 = inlined_call_operand.vmem [shape: bf16[32,128], index: 3, kind: output, shape index: {}]  }
   0x1   :  { %s1170_s14 = smov 0   ;;  %s1172_s15 = smov 0  }
   0x2   :  { %s1174_s16 = smov 0  }
   0x3 LB: > { %s25_s17 = sadd.s32 1, %s1139_s15  ;;  %p48_p1 = scmp.ne.s32.totalorder %s1131_s13, %s1127_s12  ;;  %s1143_s16 = sphi %s1174_s16, %s13_s16   ;;  %s1139_s15 = sphi %s1172_s15, %s1301_s15   ;;  %s1135_s14 = sphi %s1170_s14, %s1300_s14   ;;  %s1131_s13 = sphi %s1168_s13, %s1299_s13   ;;  %s1127_s12 = sphi %s1166_s12, %s1298_s12  }
   0x4   : > { %p26_p0 = scmp.ge.s32.totalorder %s25_s17, 2  ;;  %p49_p2 = scmp.eq.s32.totalorder %s1143_s16, 0 }
   0x5   : > { %s41_s19 = sadd.s32 1, %s1131_s13  ;;  %p837_p5 = scmp.ge.s32.totalorder %s1143_s16, 2 }
   0x6   : > { %s1303_s17 = smov (%p26_p0, %s25_s17), 0  ;;  %p50_p3 = por %p49_p2, %p48_p1 }
   0x7   : > { %s37_s18 = ssub.s32 %s1139_s15, %s1303_s17  ;;  %162 = sbr.rel (%p837_p5) target bundleno = 24 (0x18), region = 20 }
   0x8   : > { %p39_p4 = scmp.eq.s32.totalorder %s37_s18, 0 }
   0xa   : > { %s1201_s20 = scalar_select %p39_p4, %s1131_s13, %s41_s19  }
   0xc   : > { %165 = sbr.rel (!%p50_p3) target bundleno = 24 (0x18), region = 24  ;;  %s167_s21 = sand.u32 (%p50_p3), 1, %s1131_s13  }
   0xd   : > { %s1011_s22 = sshll.u32 (%p50_p3), %s1139_s15, 4  ;;  %s838_s23 = sshll.u32 (%p50_p3), %s167_s21, 6 }
   0xe   : > { %s175_s26 = scalar_lea.vmem (%p50_p3), %s1294_s0, %s1011_s22  ;;  %s169_s27 = scalar_lea.vmem (%p50_p3), [#allocation3], %s838_s23 }
   0xf   : > { %v188_v0 = vld [vmem:[%s175_s26] sm:$0xff] (%p50_p3)  ;;  %v190_v1 = vld [vmem:[%s175_s26 + $0x8] sm:$0xff] (%p50_p3) }
  0x10   : > { %v192_v2 = vld [vmem:[%s175_s26 + $0x20] sm:$0xff] (%p50_p3)  ;;  %189 = vst [vmem:[%s169_s27] sm:$0xff] (%p50_p3), %v188_v0  ;;  %v194_v3 = vld [vmem:[%s175_s26 + $0x28] sm:$0xff] (%p50_p3) }
  0x11   : > { %191 = vst [vmem:[%s169_s27 + $0x8] sm:$0xff] %v190_v1  ;;  %v196_v4 = vld [vmem:[%s175_s26 + $0x40] sm:$0xff]  ;;  %v198_v5 = vld [vmem:[%s175_s26 + $0x48] sm:$0xff] }
  0x12   : > { %193 = vst [vmem:[%s169_s27 + $0x10] sm:$0xff] %v192_v2  ;;  %v200_v6 = vld [vmem:[%s175_s26 + $0x60] sm:$0xff]  ;;  %v202_v7 = vld [vmem:[%s175_s26 + $0x68] sm:$0xff] }
  0x13   : > { %195 = vst [vmem:[%s169_s27 + $0x18] sm:$0xff] %v194_v3 }
  0x14   : > { %197 = vst [vmem:[%s169_s27 + $0x20] sm:$0xff] %v196_v4 }
  0x15   : > { %199 = vst [vmem:[%s169_s27 + $0x28] sm:$0xff] %v198_v5 }
  0x16   : > { %201 = vst [vmem:[%s169_s27 + $0x30] sm:$0xff] %v200_v6 }
  0x17   : > { %203 = vst [vmem:[%s169_s27 + $0x38] sm:$0xff] %v202_v7 }
  0x18 PF: > { %p841_p6 = scmp.ge.s32.totalorder %s1143_s16, 1  ;;  %p220_p7 = scmp.lt.s32.totalorder %s1143_s16, 3 }
  0x1a   : > { %p221_p8 = pnand %p841_p6, %p220_p7 }
  0x1b   : > { %s227_s28 = sand.u32 (!%p221_p8), 1, %s1127_s12   ;;  %s843_s29 = sshll.u32 (!%p221_p8), %s1135_s14, 6 }
  0x1c   : > { %224 = sbr.rel (%p221_p8) target bundleno = 255 (0xff), region = 51  ;;  %s842_s30 = sshll.u32 (!%p221_p8), %s227_s28, 6 }
  0x1d   : > { %p267_p9 = scmp.lt.s32.totalorder (!%p221_p8), %s843_s29, 127  ;;  %s1218_s8 = scalar_lea.vmem (!%p221_p8), [#allocation3], %s842_s30 }
  0x1e   : > { %p845_p10 = scmp.ne.s32.totalorder (!%p221_p8), %s1135_s14, 0 }
  0x21   : > { %s1305_s29 = smov (!%p267_p9, %s843_s29), 127  ;;  %290 = sbr.rel (%p845_p10) target bundleno = 43 (0x2b), region = 59 }
  0x22   : > { %s844_s4 = sshll.u32 %s1305_s29, 2 }
  0x23   : > { %s1216_s7 = scalar_lea.vmem %s1295_s1, %s844_s4 }
  0x26   : > { %v1145_v8 = vmov 0.0  }
  0x27   : > { %291 = vst [vmem:[#allocation2 + $0x10] sm:$0xff] %v1145_v8 }
  0x28   : > { %292 = vst [vmem:[#allocation2] sm:$0xff] %v1145_v8 }
  0x29   : > { %293 = vst [vmem:[#allocation2 + $0x18] sm:$0xff] %v1145_v8 }
  0x2a   : > { %294 = vst [vmem:[#allocation2 + $0x8] sm:$0xff] %v1145_v8 }
  0x2b PF: > { %v1027_v9 = vld [vmem:[%s1216_s7 + $0x38] sm:$0xff]  ;;  %v1026_v13 = vld [vmem:[%s1216_s7 + $0x30] sm:$0xff]  ;;  %v1025_v17 = vld [vmem:[%s1216_s7 + $0x28] sm:$0xff]  ;;  %p1006_p11 = scmp.ne.s32.totalorder %s1135_s14, 1 }
  0x2c   : > { %v1035_v10 = vld [vmem:[%s1216_s7 + $0x78] sm:$0xff]  ;;  %603 = vmatpush.bf16.msra.mxu0 %v1027_v9  ;;  %v1034_v14 = vld [vmem:[%s1216_s7 + $0x70] sm:$0xff]  ;;  %v1033_v18 = vld [vmem:[%s1216_s7 + $0x68] sm:$0xff] }
  0x2d   : > { %v1043_v11 = vld [vmem:[%s1216_s7 + $0xb8] sm:$0xff]  ;;  %622 = vmatpush.bf16.msra.mxu1 %v1035_v10  ;;  %v1042_v15 = vld [vmem:[%s1216_s7 + $0xb0] sm:$0xff]  ;;  %v1041_v19 = vld [vmem:[%s1216_s7 + $0xa8] sm:$0xff] }
  0x2e   : > { %v1051_v12 = vld [vmem:[%s1216_s7 + $0xf8] sm:$0xff]  ;;  %641 = vmatpush.bf16.msra.mxu2 %v1043_v11  ;;  %v1050_v16 = vld [vmem:[%s1216_s7 + $0xf0] sm:$0xff]  ;;  %v1049_v20 = vld [vmem:[%s1216_s7 + $0xe8] sm:$0xff] }
  0x2f   : > { %660 = vmatpush.bf16.msra.mxu3 %v1051_v12  ;;  %v1024_v21 = vld [vmem:[%s1216_s7 + $0x20] sm:$0xff]  ;;  %v1023_v25 = vld [vmem:[%s1216_s7 + $0x18] sm:$0xff]  ;;  %v1022_v29 = vld [vmem:[%s1216_s7 + $0x10] sm:$0xff] }
  0x30   : > { %604 = vmatpush.bf16.msra.mxu0 %v1026_v13  ;;  %v1032_v22 = vld [vmem:[%s1216_s7 + $0x60] sm:$0xff]  ;;  %v1031_v26 = vld [vmem:[%s1216_s7 + $0x58] sm:$0xff]  ;;  %v1030_v30 = vld [vmem:[%s1216_s7 + $0x50] sm:$0xff] }
  0x31   : > { %623 = vmatpush.bf16.msra.mxu1 %v1034_v14  ;;  %v1040_v23 = vld [vmem:[%s1216_s7 + $0xa0] sm:$0xff]  ;;  %v1039_v27 = vld [vmem:[%s1216_s7 + $0x98] sm:$0xff]  ;;  %v1038_v31 = vld [vmem:[%s1216_s7 + $0x90] sm:$0xff] }
  0x32   : > { %642 = vmatpush.bf16.msra.mxu2 %v1042_v15  ;;  %v1048_v24 = vld [vmem:[%s1216_s7 + $0xe0] sm:$0xff]  ;;  %v1047_v28 = vld [vmem:[%s1216_s7 + $0xd8] sm:$0xff]  ;;  %v1046_v32 = vld [vmem:[%s1216_s7 + $0xd0] sm:$0xff] }
  0x33   : > { %661 = vmatpush.bf16.msra.mxu3 %v1050_v16  ;;  %v1021_v33 = vld [vmem:[%s1216_s7 + $0x8] sm:$0xff]  ;;  %v1020_v37 = vld [vmem:[%s1216_s7] sm:$0xff]  ;;  %v1014_v42 = vld [vmem:[%s1218_s8 + $0xc] sm:$0xf0] }
  0x34   : > { %605 = vmatpush.bf16.msra.mxu0 %v1025_v17  ;;  %v1029_v34 = vld [vmem:[%s1216_s7 + $0x48] sm:$0xff]  ;;  %v1028_v38 = vld [vmem:[%s1216_s7 + $0x40] sm:$0xff]  ;;  %v850_v44 = vld [vmem:[%s1218_s8 + $0x10] sm:$0xf0] }
  0x35   : > { %624 = vmatpush.bf16.msra.mxu1 %v1033_v18  ;;  %v1037_v35 = vld [vmem:[%s1216_s7 + $0x88] sm:$0xff]  ;;  %v1036_v39 = vld [vmem:[%s1216_s7 + $0x80] sm:$0xff]  ;;  %v1015_v46 = vld [vmem:[%s1218_s8 + $0x14] sm:$0xf0] }
  0x36   : > { %643 = vmatpush.bf16.msra.mxu2 %v1041_v19  ;;  %v1045_v36 = vld [vmem:[%s1216_s7 + $0xc8] sm:$0xff]  ;;  %v1044_v40 = vld [vmem:[%s1216_s7 + $0xc0] sm:$0xff]  ;;  %v858_v48 = vld [vmem:[%s1218_s8 + $0x18] sm:$0xf0] }
  0x37   : > { %662 = vmatpush.bf16.msra.mxu3 %v1049_v20  ;;  %v848_v41 = vld [vmem:[%s1218_s8] sm:$0xf]  ;;  %v1012_v43 = vld [vmem:[%s1218_s8 + $0x4] sm:$0xf]  ;;  %v856_v45 = vld [vmem:[%s1218_s8 + $0x8] sm:$0xf] }
  0x38   : > { %606 = vmatpush.bf16.msra.mxu0 %v1024_v21  ;;  %v1013_v47 = vld [vmem:[%s1218_s8 + $0xc] sm:$0xf]  ;;  %v849_v49 = vor.u32 %v1014_v42, %v848_v41  ;;  %v853_v50 = vor.u32 %v1012_v43, %v850_v44  ;;  %v857_v51 = vor.u32 %v1015_v46, %v856_v45  ;;  %v864_v53 = vld [vmem:[%s1218_s8 + $0x20] sm:$0xf]  ;;  %v1018_v54 = vld [vmem:[%s1218_s8 + $0x2c] sm:$0xf0] }
  0x39   : > { %625 = vmatpush.bf16.msra.mxu1 %v1032_v22  ;;  %v861_v52 = vor.u32 %v1013_v47, %v858_v48  ;;  %v1016_v55 = vld [vmem:[%s1218_s8 + $0x24] sm:$0xf]  ;;  %v866_v56 = vld [vmem:[%s1218_s8 + $0x30] sm:$0xf0]  ;;  %v872_v57 = vld [vmem:[%s1218_s8 + $0x28] sm:$0xf]  ;;  %v865_v61 = vor.u32 %v1018_v54, %v864_v53 }
  0x3a   : > { %644 = vmatpush.bf16.msra.mxu2 %v1040_v23  ;;  %v1019_v58 = vld [vmem:[%s1218_s8 + $0x34] sm:$0xf0]  ;;  %v1017_v59 = vld [vmem:[%s1218_s8 + $0x2c] sm:$0xf]  ;;  %v874_v60 = vld [vmem:[%s1218_s8 + $0x38] sm:$0xf0]  ;;  %v869_v62 = vor.u32 %v1016_v55, %v866_v56 }
  0x3b   : > { %663 = vmatpush.bf16.msra.mxu3 %v1048_v24  ;;  %v873_v63 = vor.u32 %v1019_v58, %v872_v57  ;;  %v877_v0 = vor.u32 %v1017_v59, %v874_v60  ;;  %v295_v9 = vld [vmem:[#allocation2 + $0x10] sm:$0xff]  ;;  %v296_v16 = vld [vmem:[#allocation2] sm:$0xff] }
  0x3c   : > { %607 = vmatpush.bf16.msra.mxu0 %v1023_v25  ;;  %v297_v25 = vld [vmem:[#allocation2 + $0x18] sm:$0xff] }
  0x3d   : > { %626 = vmatpush.bf16.msra.mxu1 %v1031_v26 }
  0x3e   : > { %645 = vmatpush.bf16.msra.mxu2 %v1039_v27 }
  0x3f   : > { %664 = vmatpush.bf16.msra.mxu3 %v1047_v28 }
  0x40   : > { %608 = vmatpush.bf16.msra.mxu0 %v1022_v29 }
  0x41   : > { %627 = vmatpush.bf16.msra.mxu1 %v1030_v30 }
  0x42   : > { %646 = vmatpush.bf16.msra.mxu2 %v1038_v31 }
  0x43   : > { %665 = vmatpush.bf16.msra.mxu3 %v1046_v32 }
  0x44   : > { %609 = vmatpush.bf16.msra.mxu0 %v1021_v33  ;;  %v298_v33 = vld [vmem:[#allocation2 + $0x8] sm:$0xff] }
  0x45   : > { %628 = vmatpush.bf16.msra.mxu1 %v1029_v34 }
  0x46   : > { %647 = vmatpush.bf16.msra.mxu2 %v1037_v35 }
  0x47   : > { %666 = vmatpush.bf16.msra.mxu3 %v1045_v36 }
  0x48   : > { %610 = vmatpush.bf16.msra.mxu0 %v1020_v37 }
  0x49   : > { %629 = vmatpush.bf16.msra.mxu1 %v1028_v38 }
  0x4a   : > { %648 = vmatpush.bf16.msra.mxu2 %v1036_v39 }
  0x4b   : > { %667 = vmatpush.bf16.msra.mxu3 %v1044_v40  ;;  %611 = vmatmul.bf16.vlgmr.msra.gmra.mxu0 %v849_v49 }
  0x4c   : > { %630 = vmatmul.bf16.vlgmr.msra.gmra.mxu1 %v853_v50 }
  0x4d   : > { %649 = vmatmul.bf16.vlgmr.msra.gmra.mxu2 %v857_v51 }
  0x4e   : > { %668 = vmatmul.bf16.vlgmr.msra.gmra.mxu3 %v861_v52 }
  0x5b   : > { %616 = vmatmul.bf16.gmra.mxu0 %v865_v61 }
  0x5c   : > { %635 = vmatmul.bf16.gmra.mxu1 %v869_v62 }
  0x5d   : > { %654 = vmatmul.bf16.gmra.mxu2 %v873_v63 }
  0x5e   : > { %673 = vmatmul.bf16.gmra.mxu3 %v877_v0 }
  0xc8   : > { %v612_v1 = vpop.f32.mrf.mxu0 }
  0xc9   : > { %v631_v2 = vpop.f32.mrf.mxu1 }
  0xca   : > { %v632_v3 = vadd.f32 %v631_v2, %v612_v1 }
  0xd0   : > { %v650_v4 = vpop.f32.mrf.mxu2  ;;  %v614_v7 = vpop.f32.mrf.mxu0 }
  0xd1   : > { %v669_v5 = vpop.f32.mrf.mxu3  ;;  %v651_v6 = vadd.f32 %v650_v4, %v632_v3  ;;  %v633_v8 = vpop.f32.mrf.mxu1 }
  0xd2   : > { %v634_v12 = vadd.f32 %v633_v8, %v614_v7 }
  0xd3   : > { %v670_v10 = vadd.f32 %v669_v5, %v651_v6 }
  0xd5   : > { %v679_v11 = vadd.f32 %v670_v10, %v295_v9 }
  0xd7   : > { %683 = vst [vmem:[#allocation2 + $0x10] sm:$0xff] %v679_v11 }
  0xd8   : > { %v652_v13 = vpop.f32.mrf.mxu2  ;;  %v617_v17 = vpop.f32.mrf.mxu0 }
  0xd9   : > { %v671_v14 = vpop.f32.mrf.mxu3  ;;  %v653_v15 = vadd.f32 %v652_v13, %v634_v12  ;;  %v636_v18 = vpop.f32.mrf.mxu1 }
  0xda   : > { %v637_v21 = vadd.f32 %v636_v18, %v617_v17 }
  0xdb   : > { %v672_v19 = vadd.f32 %v671_v14, %v653_v15 }
  0xdd   : > { %v680_v20 = vadd.f32 %v672_v19, %v296_v16 }
  0xdf   : > { %684 = vst [vmem:[#allocation2] sm:$0xff] %v680_v20 }
  0xe0   : > { %v655_v22 = vpop.f32.mrf.mxu2  ;;  %v619_v27 = vpop.f32.mrf.mxu0 }
  0xe1   : > { %v674_v23 = vpop.f32.mrf.mxu3  ;;  %v656_v24 = vadd.f32 %v655_v22, %v637_v21  ;;  %v638_v28 = vpop.f32.mrf.mxu1 }
  0xe2   : > { %v639_v30 = vadd.f32 %v638_v28, %v619_v27 }
  0xe3   : > { %v675_v26 = vadd.f32 %v674_v23, %v656_v24 }
  0xe5   : > { %v681_v29 = vadd.f32 %v675_v26, %v297_v25 }
  0xe7   : > { %685 = vst [vmem:[#allocation2 + $0x18] sm:$0xff] %v681_v29 }
  0xe8   : > { %v657_v31 = vpop.f32.mrf.mxu2 }
  0xe9   : > { %v658_v32 = vadd.f32 %v657_v31, %v639_v30  ;;  %v676_v34 = vpop.f32.mrf.mxu3 }
  0xeb   : > { %v677_v35 = vadd.f32 %v676_v34, %v658_v32  ;;  %690 = sbr.rel (%p1006_p11) target bundleno = 255 (0xff), region = 63 }
  0xed   : > { %v682_v36 = vadd.f32 %v677_v35, %v298_v33 }
  0xef   : > { %686 = vst [vmem:[#allocation2 + $0x8] sm:$0xff] %v682_v36 }
  0xf0   : > { %v691_v37 = vld [vmem:[#allocation2 + $0x10] sm:$0xff]  ;;  %v692_v38 = vld [vmem:[#allocation2] sm:$0xff]  ;;  %v693_v40 = vld [vmem:[#allocation2 + $0x18] sm:$0xff] }
  0xf1   : > { %v1104_v39 = vld [vmem:[%s1296_s2] ss:$0 sm:$0xff] }
  0xf2   : > { %v699_v42 = vadd.f32 %v1104_v39, %v691_v37  ;;  %v700_v43 = vadd.f32 %v1104_v39, %v692_v38  ;;  %v701_v44 = vadd.f32 %v1104_v39, %v693_v40 }
  0xf4   : > { %vm703_vm0 = vcmp.ge.f32.partialorder %v699_v42, 0.0  ;;  %vm704_vm1 = vcmp.ge.f32.partialorder %v700_v43, 0.0  ;;  %v707_v46 = vmul.f32 0.01, %v699_v42  ;;  %v708_v47 = vmul.f32 0.01, %v700_v43 }
  0xf5   : > { %vm705_vm2 = vcmp.ge.f32.partialorder %v701_v44, 0.0  ;;  %v709_v48 = vmul.f32 0.01, %v701_v44 }
  0xf6   : > { %v694_v41 = vld [vmem:[#allocation2 + $0x8] sm:$0xff]  ;;  %v711_v50 = vsel %vm703_vm0, %v699_v42, %v707_v46  ;;  %v712_v51 = vsel %vm704_vm1, %v700_v43, %v708_v47 }
  0xf7   : > { %v702_v45 = vadd.f32 %v1104_v39, %v694_v41  ;;  %v1055_v52 = vpack.c.bf16 %v712_v51, %v711_v50  ;;  %v713_v53 = vsel %vm705_vm2, %v701_v44, %v709_v48 }
  0xf9   : > { %vm706_vm3 = vcmp.ge.f32.partialorder %v702_v45, 0.0  ;;  %v710_v49 = vmul.f32 0.01, %v702_v45  ;;  %1056 = vst [vmem:[%s1297_s3] sm:$0xff] %v1055_v52  }
  0xfb   : > { %v714_v54 = vsel %vm706_vm3, %v702_v45, %v710_v49 }
  0xfc   : > { %v1060_v55 = vpack.c.bf16 %v714_v54, %v713_v53 }
  0xfe   : > { %1062 = vst [vmem:[%s1297_s3 + $0x8] sm:$0xff] %v1060_v55  }
  0xff PF: > { %s13_s16 = sadd.s32 1, %s1143_s16   ;;  %s1298_s12 = smov %s1131_s13 }
 0x100   : > { %p10_p12 = scmp.ge.s32.totalorder %s13_s16, 4   ;;  %s1299_s13 = smov %s1201_s20 }
 0x101   : > { %s1300_s14 = smov %s1139_s15  ;;  %s1301_s15 = smov %s1303_s17 }
 0x102   :  { %12 = sbr.rel (!%p10_p12) target bundleno = 3 (0x3), region = 104 }

// kernel: _lambda_.7
= control target key start
LH: loop header
LB: loop body
LE: loop exit
PB: predicated region body
PF: predicated region fallthrough
CT: control target
= control target key end

     0   :  { %s952_s12 = smov 0   ;;  %s954_s13 = smov 0   ;;  %s1035_s0 = inlined_call_operand.vmem [shape: bf16[8,2048], index: 0, kind: input, shape index: {}]   ;;  %s1036_s1 = inlined_call_operand.vmem [shape: bf16[2048,128], index: 1, kind: input, shape index: {}]   ;;  %s1037_s2 = inlined_call_operand.vmem [shape: f32[1,128], index: 2, kind: input, shape index: {}]   ;;  %s1038_s3 = inlined_call_operand.vmem [shape: f32[8,128], index: 3, kind: output, shape index: {}]  }
   0x1   :  { %s956_s14 = smov 0  }
   0x2 LB: > { %s25_s15 = sadd.s32 1, %s925_s13  ;;  %p711_p0 = scmp.ge.s32.totalorder %s929_s14, 1  ;;  %s929_s14 = sphi %s956_s14, %s13_s14   ;;  %s925_s13 = sphi %s954_s13, %s1040_s13   ;;  %s921_s12 = sphi %s952_s12, %s1039_s12  }
   0x3   : > { %p26_p1 = scmp.ge.s32.totalorder %s25_s15, 4  ;;  %p189_p2 = scmp.lt.s32.totalorder %s929_s14, 5 }
   0x5   : > { %s1042_s15 = smov (%p26_p1, %s25_s15), 0  ;;  %p190_p3 = pnand %p711_p0, %p189_p2 }
   0x6   : > { %s712_s16 = sshll.u32 (!%p190_p3), %s921_s12, 2  ;;  %s714_s17 = sshll.u32 (!%p190_p3), %s921_s12, 6 }
   0x7   : > { %193 = sbr.rel (%p190_p3) target bundleno = 205 (0xcd), region = 32  ;;  %p233_p4 = scmp.lt.s32.totalorder (!%p190_p3), %s712_s16, 15 }
   0x8   : > { %p241_p5 = scmp.lt.s32.totalorder (!%p190_p3), %s714_s17, 255  ;;  %p716_p6 = scmp.ne.s32.totalorder (!%p190_p3), %s921_s12, 0 }
   0xc   : > { %s1044_s16 = smov (!%p233_p4, %s712_s16), 15  ;;  %s1046_s17 = smov (!%p241_p5, %s714_s17), 255 }
   0xd   : > { %s713_s18 = sshll.u32 %s1044_s16, 2  ;;  %s715_s22 = sshll.u32 %s1046_s17, 2 }
   0xe   : > { %s977_s21 = scalar_lea.vmem %s1035_s0, %s713_s18  ;;  %s982_s25 = scalar_lea.vmem %s1036_s1, %s715_s22 }
   0xf   : > { %262 = sbr.rel (%p716_p6) target bundleno = 22 (0x16), region = 36 }
  0x14   : > { %v931_v0 = vmov 0.0  }
  0x15   : > { %263 = vst [vmem:[#allocation2] sm:$0xff] %v931_v0 }
  0x16 PF: > { %v856_v1 = vld [vmem:[%s982_s25 + $0x38] sm:$0xff]  ;;  %v855_v5 = vld [vmem:[%s982_s25 + $0x30] sm:$0xff]  ;;  %v854_v9 = vld [vmem:[%s982_s25 + $0x28] sm:$0xff]  ;;  %p845_p7 = scmp.ne.s32.totalorder %s921_s12, 3 }
  0x17   : > { %v864_v2 = vld [vmem:[%s982_s25 + $0x78] sm:$0xff]  ;;  %537 = vmatpush.bf16.msra.mxu0 %v856_v1  ;;  %v863_v6 = vld [vmem:[%s982_s25 + $0x70] sm:$0xff]  ;;  %v862_v10 = vld [vmem:[%s982_s25 + $0x68] sm:$0xff] }
  0x18   : > { %v872_v3 = vld [vmem:[%s982_s25 + $0xb8] sm:$0xff]  ;;  %550 = vmatpush.bf16.msra.mxu1 %v864_v2  ;;  %v871_v7 = vld [vmem:[%s982_s25 + $0xb0] sm:$0xff]  ;;  %v870_v11 = vld [vmem:[%s982_s25 + $0xa8] sm:$0xff] }
  0x19   : > { %v880_v4 = vld [vmem:[%s982_s25 + $0xf8] sm:$0xff]  ;;  %563 = vmatpush.bf16.msra.mxu2 %v872_v3  ;;  %v879_v8 = vld [vmem:[%s982_s25 + $0xf0] sm:$0xff]  ;;  %v878_v12 = vld [vmem:[%s982_s25 + $0xe8] sm:$0xff] }
  0x1a   : > { %576 = vmatpush.bf16.msra.mxu3 %v880_v4  ;;  %v853_v13 = vld [vmem:[%s982_s25 + $0x20] sm:$0xff]  ;;  %v852_v17 = vld [vmem:[%s982_s25 + $0x18] sm:$0xff]  ;;  %v851_v21 = vld [vmem:[%s982_s25 + $0x10] sm:$0xff] }
  0x1b   : > { %538 = vmatpush.bf16.msra.mxu0 %v855_v5  ;;  %v861_v14 = vld [vmem:[%s982_s25 + $0x60] sm:$0xff]  ;;  %v860_v18 = vld [vmem:[%s982_s25 + $0x58] sm:$0xff]  ;;  %v859_v22 = vld [vmem:[%s982_s25 + $0x50] sm:$0xff] }
  0x1c   : > { %551 = vmatpush.bf16.msra.mxu1 %v863_v6  ;;  %v869_v15 = vld [vmem:[%s982_s25 + $0xa0] sm:$0xff]  ;;  %v868_v19 = vld [vmem:[%s982_s25 + $0x98] sm:$0xff]  ;;  %v867_v23 = vld [vmem:[%s982_s25 + $0x90] sm:$0xff] }
  0x1d   : > { %564 = vmatpush.bf16.msra.mxu2 %v871_v7  ;;  %v877_v16 = vld [vmem:[%s982_s25 + $0xe0] sm:$0xff]  ;;  %v876_v20 = vld [vmem:[%s982_s25 + $0xd8] sm:$0xff]  ;;  %v875_v24 = vld [vmem:[%s982_s25 + $0xd0] sm:$0xff] }
  0x1e   : > { %577 = vmatpush.bf16.msra.mxu3 %v879_v8  ;;  %v850_v25 = vld [vmem:[%s982_s25 + $0x8] sm:$0xff]  ;;  %v265_v27 = vld [vmem:[%s977_s21] sm:$0xff] }
  0x1f   : > { %539 = vmatpush.bf16.msra.mxu0 %v854_v9  ;;  %v858_v26 = vld [vmem:[%s982_s25 + $0x48] sm:$0xff]  ;;  %v333_v31 = vunpack.c.l.b16 %v265_v27  ;;  %v334_v32 = vunpack.c.h.b16 %v265_v27  ;;  %v849_v33 = vld [vmem:[%s982_s25] sm:$0xff] }
  0x20   : > { %552 = vmatpush.bf16.msra.mxu1 %v862_v10  ;;  %v866_v28 = vld [vmem:[%s982_s25 + $0x88] sm:$0xff]  ;;  %v857_v34 = vld [vmem:[%s982_s25 + $0x40] sm:$0xff] }
  0x21   : > { %565 = vmatpush.bf16.msra.mxu2 %v870_v11  ;;  %v874_v29 = vld [vmem:[%s982_s25 + $0xc8] sm:$0xff]  ;;  %v865_v37 = vld [vmem:[%s982_s25 + $0x80] sm:$0xff]  ;;  %v337_v39 = vpack.c.b16 %v333_v31, %v333_v31  ;;  %v338_v40 = vpack.c.b16 %v334_v32, %v334_v32 }
  0x22   : > { %578 = vmatpush.bf16.msra.mxu3 %v878_v12  ;;  %v266_v30 = vld [vmem:[%s977_s21 + $0x8] sm:$0xff]  ;;  %v873_v38 = vld [vmem:[%s982_s25 + $0xc0] sm:$0xff] }
  0x23   : > { %540 = vmatpush.bf16.msra.mxu0 %v853_v13  ;;  %v335_v35 = vunpack.c.l.b16 %v266_v30  ;;  %v336_v36 = vunpack.c.h.b16 %v266_v30  ;;  %v264_v51 = vld [vmem:[#allocation2] sm:$0xff] }
  0x24   : > { %553 = vmatpush.bf16.msra.mxu1 %v861_v14 }
  0x25   : > { %566 = vmatpush.bf16.msra.mxu2 %v869_v15  ;;  %v339_v41 = vpack.c.b16 %v335_v35, %v335_v35  ;;  %v340_v42 = vpack.c.b16 %v336_v36, %v336_v36 }
  0x26   : > { %579 = vmatpush.bf16.msra.mxu3 %v877_v16 }
  0x27   : > { %541 = vmatpush.bf16.msra.mxu0 %v852_v17 }
  0x28   : > { %554 = vmatpush.bf16.msra.mxu1 %v860_v18 }
  0x29   : > { %567 = vmatpush.bf16.msra.mxu2 %v868_v19 }
  0x2a   : > { %580 = vmatpush.bf16.msra.mxu3 %v876_v20 }
  0x2b   : > { %542 = vmatpush.bf16.msra.mxu0 %v851_v21 }
  0x2c   : > { %555 = vmatpush.bf16.msra.mxu1 %v859_v22 }
  0x2d   : > { %568 = vmatpush.bf16.msra.mxu2 %v867_v23 }
  0x2e   : > { %581 = vmatpush.bf16.msra.mxu3 %v875_v24 }
  0x2f   : > { %543 = vmatpush.bf16.msra.mxu0 %v850_v25 }
  0x30   : > { %556 = vmatpush.bf16.msra.mxu1 %v858_v26 }
  0x31   : > { %569 = vmatpush.bf16.msra.mxu2 %v866_v28 }
  0x32   : > { %582 = vmatpush.bf16.msra.mxu3 %v874_v29 }
  0x33   : > { %544 = vmatpush.bf16.msra.mxu0 %v849_v33 }
  0x34   : > { %557 = vmatpush.bf16.msra.mxu1 %v857_v34 }
  0x35   : > { %570 = vmatpush.bf16.msra.mxu2 %v865_v37 }
  0x36   : > { %583 = vmatpush.bf16.msra.mxu3 %v873_v38  ;;  %545 = vmatmul.bf16.vlgmr.msra.gmra.mxu0 %v337_v39 }
  0x37   : > { %558 = vmatmul.bf16.vlgmr.msra.gmra.mxu1 %v338_v40 }
  0x38   : > { %571 = vmatmul.bf16.vlgmr.msra.gmra.mxu2 %v339_v41 }
  0x39   : > { %584 = vmatmul.bf16.vlgmr.msra.gmra.mxu3 %v340_v42 }
  0xb3   : > { %v546_v43 = vpop.f32.mrf.mxu0 }
  0xb4   : > { %v559_v44 = vpop.f32.mrf.mxu1 }
  0xb5   : > { %v560_v45 = vadd.f32 %v559_v44, %v546_v43 }
  0xbb   : > { %v572_v46 = vpop.f32.mrf.mxu2  ;;  %v548_v49 = vpop.f32.mrf.mxu0 }
  0xbc   : > { %v585_v47 = vpop.f32.mrf.mxu3  ;;  %v573_v48 = vadd.f32 %v572_v46, %v560_v45  ;;  %v561_v50 = vpop.f32.mrf.mxu1 }
  0xbe   : > { %v586_v52 = vadd.f32 %v585_v47, %v573_v48 }
  0xc0   : > { %v589_v53 = vadd.f32 %v586_v52, %v264_v51  ;;  %594 = sbr.rel (%p845_p7) target bundleno = 205 (0xcd), region = 40 }
  0xc2   : > { %590 = vst [vmem:[#allocation2] sm:$0xff] %v589_v53 }
  0xc3   : > { %v574_v54 = vpop.f32.mrf.mxu2 }
  0xc4   : > { %v587_v55 = vpop.f32.mrf.mxu3 }
  0xc5   : > { %v906_v57 = vld [vmem:[%s1037_s2] ss:$0 sm:$0xff] }
  0xc9   : > { %v595_v56 = vld [vmem:[#allocation2] sm:$0xff] }
  0xca   : > { %v600_v58 = vadd.f32 %v906_v57, %v595_v56 }
  0xcc   : > { %601 = vst [vmem:[%s1038_s3] sm:$0xff] %v600_v58 }
  0xcd PF: > { %s13_s14 = sadd.s32 1, %s929_s14   ;;  %s1039_s12 = smov %s925_s13 }
  0xce   : > { %p10_p8 = scmp.ge.s32.totalorder %s13_s14, 6   ;;  %s1040_s13 = smov %s1042_s15 }
  0xd0   :  { %12 = sbr.rel (!%p10_p8) target bundleno = 2 (0x2), region = 76 }

// kernel: _lambda_.6
= control target key start
LH: loop header
LB: loop body
LE: loop exit
PB: predicated region body
PF: predicated region fallthrough
CT: control target
= control target key end

     0   :  { %s733_s12 = smov 0   ;;  %s735_s13 = smov 0   ;;  %s832_s0 = inlined_call_operand.vmem [shape: bf16[32,1152], index: 0, kind: input, shape index: {}]   ;;  %s833_s1 = inlined_call_operand.vmem [shape: bf16[1152,128], index: 1, kind: input, shape index: {}]   ;;  %s834_s2 = inlined_call_operand.vmem [shape: f32[1,128], index: 2, kind: input, shape index: {}]   ;;  %s835_s3 = inlined_call_operand.vmem [shape: f32[32,128], index: 3, kind: output, shape index: {}]  }
   0x1   :  { %s737_s14 = smov 0   ;;  %s739_s15 = smov 0  }
   0x2   :  { %s741_s16 = smov 0  }
   0x3 LB: > { %s25_s17 = sadd.s32 1, %s706_s15  ;;  %p48_p1 = scmp.ne.s32.totalorder %s698_s13, %s694_s12  ;;  %s710_s16 = sphi %s741_s16, %s13_s16   ;;  %s706_s15 = sphi %s739_s15, %s839_s15   ;;  %s702_s14 = sphi %s737_s14, %s838_s14   ;;  %s698_s13 = sphi %s735_s13, %s837_s13   ;;  %s694_s12 = sphi %s733_s12, %s836_s12  }
   0x4   : > { %p26_p0 = scmp.ge.s32.totalorder %s25_s17, 9  ;;  %p49_p2 = scmp.eq.s32.totalorder %s710_s16, 0 }
   0x5   : > { %s41_s19 = sadd.s32 1, %s698_s13  ;;  %p559_p5 = scmp.ge.s32.totalorder %s710_s16, 9 }
   0x6   : > { %s841_s17 = smov (%p26_p0, %s25_s17), 0  ;;  %p50_p3 = por %p49_p2, %p48_p1 }
   0x7   : > { %s37_s18 = ssub.s32 %s706_s15, %s841_s17  ;;  %162 = sbr.rel (%p559_p5) target bundleno = 20 (0x14), region = 20 }
   0x8   : > { %p39_p4 = scmp.eq.s32.totalorder %s37_s18, 0 }
   0xa   : > { %s768_s20 = scalar_select %p39_p4, %s698_s13, %s41_s19  }
   0xc   : > { %165 = sbr.rel (!%p50_p3) target bundleno = 20 (0x14), region = 24  ;;  %s167_s21 = sand.u32 (%p50_p3), 1, %s698_s13  }
   0xd   : > { %s561_s22 = sshll.u32 (%p50_p3), %s706_s15, 2  ;;  %s560_s23 = sshll.u32 (%p50_p3), %s167_s21, 4 }
   0xe   : > { %s174_s26 = scalar_lea.vmem (%p50_p3), %s832_s0, %s561_s22  ;;  %s169_s27 = scalar_lea.vmem (%p50_p3), [#allocation3], %s560_s23 }
   0xf   : > { %v191_v0 = vld [vmem:[%s174_s26] sm:$0xf] (%p50_p3)  ;;  %v193_v1 = vld [vmem:[%s174_s26 + $0x24] sm:$0xf] (%p50_p3)  ;;  %v195_v2 = vld [vmem:[%s174_s26 + $0x48] sm:$0xf] (%p50_p3) }
  0x10   : > { %192 = vst [vmem:[%s169_s27] sm:$0xf] (%p50_p3), %v191_v0  ;;  %v197_v3 = vld [vmem:[%s174_s26 + $0x6c] sm:$0xf] (%p50_p3) }
  0x11   : > { %194 = vst [vmem:[%s169_s27 + $0x4] sm:$0xf] %v193_v1 }
  0x12   : > { %196 = vst [vmem:[%s169_s27 + $0x8] sm:$0xf] %v195_v2 }
  0x13   : > { %198 = vst [vmem:[%s169_s27 + $0xc] sm:$0xf] %v197_v3 }
  0x14 PF: > { %p562_p6 = scmp.ge.s32.totalorder %s710_s16, 1  ;;  %p241_p7 = scmp.lt.s32.totalorder %s710_s16, 10 }
  0x16   : > { %p242_p8 = pnand %p562_p6, %p241_p7 }
  0x17   : > { %s248_s28 = sand.u32 (!%p242_p8), 1, %s694_s12   ;;  %s564_s29 = sshll.u32 (!%p242_p8), %s702_s14, 4 }
  0x18   : > { %245 = sbr.rel (%p242_p8) target bundleno = 219 (0xdb), region = 69  ;;  %s780_s30 = sshll.u32 (!%p242_p8), %s248_s28, 4 }
  0x19   : > { %p287_p9 = scmp.lt.s32.totalorder (!%p242_p8), %s564_s29, 143  ;;  %s250_s8 = scalar_lea.vmem (!%p242_p8), [#allocation3], %s780_s30 }
  0x1a   : > { %p566_p10 = scmp.ne.s32.totalorder (!%p242_p8), %s702_s14, 0 }
  0x1d   : > { %s843_s29 = smov (!%p287_p9, %s564_s29), 143  ;;  %310 = sbr.rel (%p566_p10) target bundleno = 39 (0x27), region = 77 }
  0x1e   : > { %s565_s4 = sshll.u32 %s843_s29, 2 }
  0x1f   : > { %s785_s7 = scalar_lea.vmem %s833_s1, %s565_s4 }
  0x22   : > { %v712_v4 = vmov 0.0  }
  0x23   : > { %311 = vst [vmem:[#allocation2 + $0x10] sm:$0xff] %v712_v4 }
  0x24   : > { %312 = vst [vmem:[#allocation2] sm:$0xff] %v712_v4 }
  0x25   : > { %313 = vst [vmem:[#allocation2 + $0x18] sm:$0xff] %v712_v4 }
  0x26   : > { %314 = vst [vmem:[#allocation2 + $0x8] sm:$0xff] %v712_v4 }
  0x27 PF: > { %v621_v5 = vld [vmem:[%s785_s7 + $0x38] sm:$0xff]  ;;  %v620_v6 = vld [vmem:[%s785_s7 + $0x30] sm:$0xff]  ;;  %v619_v7 = vld [vmem:[%s785_s7 + $0x28] sm:$0xff]  ;;  %p607_p11 = scmp.ne.s32.totalorder %s702_s14, 8 }
  0x28   : > { %399 = vmatpush.bf16.msra.mxu0 %v621_v5  ;;  %622 = vmatpush.bf16.msra.mxu1 %v621_v5  ;;  %v618_v8 = vld [vmem:[%s785_s7 + $0x20] sm:$0xff]  ;;  %v617_v9 = vld [vmem:[%s785_s7 + $0x18] sm:$0xff]  ;;  %v616_v10 = vld [vmem:[%s785_s7 + $0x10] sm:$0xff] }
  0x29   : > { %v615_v11 = vld [vmem:[%s785_s7 + $0x8] sm:$0xff]  ;;  %v614_v12 = vld [vmem:[%s785_s7] sm:$0xff] }
  0x2a   : > { %v612_v13 = vld [vmem:[%s250_s8] sm:$0xff]  ;;  %v613_v14 = vld [vmem:[%s250_s8 + $0x8] sm:$0xff] }
  0x2b   : > { %v315_v15 = vld [vmem:[#allocation2 + $0x10] sm:$0xff]  ;;  %v316_v21 = vld [vmem:[#allocation2] sm:$0xff] }
  0x2c   : > { %400 = vmatpush.bf16.msra.mxu0 %v620_v6  ;;  %623 = vmatpush.bf16.msra.mxu1 %v620_v6  ;;  %v317_v16 = vld [vmem:[#allocation2 + $0x18] sm:$0xff] }
  0x2d   : > { %v318_v22 = vld [vmem:[#allocation2 + $0x8] sm:$0xff] }
  0x30   : > { %401 = vmatpush.bf16.msra.mxu0 %v619_v7  ;;  %624 = vmatpush.bf16.msra.mxu1 %v619_v7 }
  0x34   : > { %402 = vmatpush.bf16.msra.mxu0 %v618_v8  ;;  %625 = vmatpush.bf16.msra.mxu1 %v618_v8 }
  0x38   : > { %403 = vmatpush.bf16.msra.mxu0 %v617_v9  ;;  %626 = vmatpush.bf16.msra.mxu1 %v617_v9 }
  0x3c   : > { %404 = vmatpush.bf16.msra.mxu0 %v616_v10  ;;  %627 = vmatpush.bf16.msra.mxu1 %v616_v10 }
  0x40   : > { %405 = vmatpush.bf16.msra.mxu0 %v615_v11  ;;  %628 = vmatpush.bf16.msra.mxu1 %v615_v11 }
  0x44   : > { %406 = vmatpush.bf16.msra.mxu0 %v614_v12  ;;  %629 = vmatpush.bf16.msra.mxu1 %v614_v12 }
  0x47   : > { %407 = vmatmul.bf16.vlgmr.msra.gmra.mxu0 %v612_v13  ;;  %412 = vmatmul.bf16.vlgmr.msra.gmra.mxu1 %v613_v14 }
  0xc4   : > { %v408_v17 = vpop.f32.mrf.mxu0  ;;  %v413_v18 = vpop.f32.mrf.mxu1 }
  0xc5   : > { %v418_v19 = vadd.f32 %v408_v17, %v315_v15  ;;  %v420_v20 = vadd.f32 %v413_v18, %v317_v16 }
  0xc7   : > { %422 = vst [vmem:[#allocation2 + $0x10] sm:$0xff] %v418_v19 }
  0xc8   : > { %424 = vst [vmem:[#allocation2 + $0x18] sm:$0xff] %v420_v20 }
  0xcc   : > { %v410_v23 = vpop.f32.mrf.mxu0  ;;  %v415_v24 = vpop.f32.mrf.mxu1  ;;  %429 = sbr.rel (%p607_p11) target bundleno = 219 (0xdb), region = 81 }
  0xcd   : > { %v419_v25 = vadd.f32 %v410_v23, %v316_v21  ;;  %v421_v26 = vadd.f32 %v415_v24, %v318_v22 }
  0xcf   : > { %423 = vst [vmem:[#allocation2] sm:$0xff] %v419_v25 }
  0xd0   : > { %425 = vst [vmem:[#allocation2 + $0x8] sm:$0xff] %v421_v26 }
  0xd1   : > { %v430_v27 = vld [vmem:[#allocation2 + $0x10] sm:$0xff]  ;;  %v671_v28 = vld [vmem:[%s834_s2] ss:$0 sm:$0xff]  ;;  %v432_v30 = vld [vmem:[#allocation2 + $0x18] sm:$0xff] }
  0xd2   : > { %v438_v32 = vadd.f32 %v671_v28, %v430_v27  ;;  %v440_v34 = vadd.f32 %v671_v28, %v432_v30 }
  0xd4   : > { %442 = vst [vmem:[%s835_s3] sm:$0xff] %v438_v32 }
  0xd5   : > { %444 = vst [vmem:[%s835_s3 + $0x10] sm:$0xff] %v440_v34 }
  0xd6   : > { %v431_v29 = vld [vmem:[#allocation2] sm:$0xff] }
  0xd7   : > { %v433_v31 = vld [vmem:[#allocation2 + $0x8] sm:$0xff]  ;;  %v439_v33 = vadd.f32 %v671_v28, %v431_v29 }
  0xd8   : > { %v441_v35 = vadd.f32 %v671_v28, %v433_v31 }
  0xd9   : > { %443 = vst [vmem:[%s835_s3 + $0x8] sm:$0xff] %v439_v33 }
  0xda   : > { %445 = vst [vmem:[%s835_s3 + $0x18] sm:$0xff] %v441_v35 }
  0xdb PF: > { %s13_s16 = sadd.s32 1, %s710_s16   ;;  %s836_s12 = smov %s698_s13 }
  0xdc   : > { %p10_p12 = scmp.ge.s32.totalorder %s13_s16, 11   ;;  %s837_s13 = smov %s768_s20 }
  0xdd   : > { %s838_s14 = smov %s706_s15  ;;  %s839_s15 = smov %s841_s17 }
  0xde   :  { %12 = sbr.rel (!%p10_p12) target bundleno = 3 (0x3), region = 122 }

</bundles_post_ra>
